<compile_context>
chip_gen: v7x
topology: tpu7x:2x2x1
jax: 0.10.0
libtpu: 0.0.40
codegen_flags: <defaults>
</compile_context>

<pallas_src>
import functools

import jax
import jax.numpy as jnp
from jax.experimental import pallas as pl
from jax.experimental.pallas import tpu as pltpu


def _smoothness_kernel(idepth_ref, image_ref, out_ref, *, inv_nx, inv_ny):
    tb, th, w = idepth_ref.shape          # depth channel squeezed by BlockSpec
    _, c, _, _ = image_ref.shape

    d = idepth_ref[...]                                    # (TB, TH, W)

    # Finite differences as full-shape rolled differences (XLU) + wrap masks.
    # pltpu.roll matches jnp.roll: with shift == n - 1, rolled[..., j] == x[..., (j+1) % n].
    d_dx = d - pltpu.roll(d, shift=w - 1, axis=2)          # d[j] - d[j+1]
    d_dy = d - pltpu.roll(d, shift=th - 1, axis=1)         # d[r] - d[r+1]

    # Per-channel accumulation of |dI| (avoids (TB, C, TH, W) intermediates).
    gx = None
    gy = None
    for ci in range(c):                                    # unrolled; C is small
        ic = image_ref[:, ci, :, :]                        # (TB, TH, W)
        axc = jnp.abs(ic - pltpu.roll(ic, shift=w - 1, axis=2))
        ayc = jnp.abs(ic - pltpu.roll(ic, shift=th - 1, axis=1))
        gx = axc if gx is None else gx + axc
        gy = ayc if gy is None else gy + ayc

    inv_c = 1.0 / c
    wx = jnp.exp(-(gx * inv_c))                            # (TB, TH, W)
    wy = jnp.exp(-(gy * inv_c))

    # 2-D wrap masks, broadcast over the batch dim; applied once to the
    # weighted term (kills the wrap-around column / row).
    col = jax.lax.broadcasted_iota(jnp.int32, (th, w), 1)
    row = jax.lax.broadcasted_iota(jnp.int32, (th, w), 0)
    sx = jnp.sum(jnp.where(col < (w - 1), jnp.abs(d_dx) * wx, 0.0),
                 dtype=jnp.float32)
    sy = jnp.sum(jnp.where(row < (th - 1), jnp.abs(d_dy) * wy, 0.0),
                 dtype=jnp.float32)

    # One pre-scaled partial per grid step, written lane-dense.
    val = sx * inv_nx + sy * inv_ny
    out_ref[...] = jnp.full(out_ref.shape, val, dtype=out_ref.dtype)


def _vmem_params():
    """Return (per-block input byte budget, vmem_limit cap) for this TPU gen."""
    try:
        vmem_bytes = int(pltpu.get_tpu_info().vmem_capacity_bytes)
    except Exception:
        vmem_bytes = 64 * 1024 * 1024                      # conservative default
    if vmem_bytes <= 64 * 1024 * 1024:                     # v7x-class (64 MiB/TC)
        return 5 * 1024 * 1024, 48 * 1024 * 1024
    return 8 * 1024 * 1024, 96 * 1024 * 1024               # v5e / v6e (128 MiB)


def _largest_batch_tile(n, per_frame_bytes, budget):
    for cand in range(n, 0, -1):                           # budget alone decides
        if n % cand == 0 and cand * per_frame_bytes <= budget:
            return cand
    return 1


def _choose_row_tile(h, per_row_bytes, budget):
    if h <= 8 or h * per_row_bytes <= budget:
        return h
    max_rows = max(8, int(budget // max(per_row_bytes, 1)))
    th = (max_rows // 8) * 8
    while th >= 8:
        if h % th == 0:
            return th                                      # multiple of 8, divides H
        th -= 8
    return h                                               # no aligned divisor -> full height


def inverse_depth_smoothness_loss(idepth: jax.Array, image: jax.Array,
                                  *, batch_tile=None, row_tile=None) -> jax.Array:
    assert idepth.ndim == 4 and image.ndim == 4
    assert idepth.shape[-2:] == image.shape[-2:]
    assert idepth.shape[0] == image.shape[0]
    assert idepth.dtype == image.dtype

    N, Cd, H, W = idepth.shape
    _, Ci, _, _ = image.shape
    assert Cd == 1, "inverse depth must have a single channel (N, 1, H, W)"

    itemsize = jnp.dtype(idepth.dtype).itemsize
    budget, vmem_cap = _vmem_params()
    per_frame = (Cd + Ci) * H * W * itemsize

    if batch_tile is None:
        TB = _largest_batch_tile(N, per_frame, budget)
    else:
        TB = int(batch_tile)
        assert N % TB == 0
    if row_tile is None:
        TH = _choose_row_tile(H, TB * (Cd + Ci) * W * itemsize, budget)
    else:
        TH = int(row_tile)
        assert H % TH == 0 and (TH == H or TH % 8 == 0)

    NB, NR = N // TB, H // TH

    # Keep both v7x TensorCores busy: ensure the parallel grid has >= 2 steps.
    if batch_tile is None and row_tile is None and NB * NR < 2:
        if N >= 2:
            tb = TB // 2
            while tb >= 1 and N % tb != 0:
                tb -= 1
            TB = max(tb, 1)
            NB = N // TB
        elif H >= 16 and H % 16 == 0:
            TH = H // 2
            NR = H // TH

    block_bytes = TB * (Cd + Ci) * TH * W * itemsize
    vmem_limit = int(min(vmem_cap, max(32 * 1024 * 1024, 6 * block_bytes)))

    n_x = N * H * (W - 1)
    n_y = N * (H - 1) * W
    # Degenerate W==1 / H==1 -> empty gradient tensor; torch.mean gives NaN.
    inv_nx = (1.0 / n_x) if n_x > 0 else float("nan")
    inv_ny = (1.0 / n_y) if n_y > 0 else float("nan")

    kernel = functools.partial(_smoothness_kernel, inv_nx=inv_nx, inv_ny=inv_ny)

    cost = pl.CostEstimate(
        flops=int((10 + 7 * Ci) * N * H * W),
        transcendentals=int(2 * N * H * W),
        bytes_accessed=int((Cd + Ci) * N * H * W * itemsize),
    )

    partial_sums = pl.pallas_call(
        kernel,
        out_shape=jax.ShapeDtypeStruct((NB, NR, 8, 128), jnp.float32),
        grid_spec=pltpu.PrefetchScalarGridSpec(
            num_scalar_prefetch=0,
            grid=(NB, NR),
            in_specs=[
                # Depth channel squeezed out: kernel ref is (TB, TH, W).
                pl.BlockSpec((TB, None, TH, W), lambda b, t: (b, 0, t, 0)),
                pl.BlockSpec((TB, Ci, TH, W), lambda b, t: (b, 0, t, 0)),
            ],
            out_specs=pl.BlockSpec((1, 1, 8, 128), lambda b, t: (b, t, 0, 0)),
        ),
        compiler_params=pltpu.CompilerParams(
            dimension_semantics=("parallel", "parallel"),
            vmem_limit_bytes=vmem_limit,
        ),
        cost_estimate=cost,
    )(idepth, image)

    total = jnp.sum(partial_sums[:, :, 0, 0])

    # y-gradient terms that straddle a row-tile boundary (NR-1 rows per batch):
    # negligible work, done in plain JAX glue.
    if NR > 1:
        d_t = idepth.reshape(N, NR, TH, W).astype(jnp.float32)
        i_t = image.reshape(N, Ci, NR, TH, W).astype(jnp.float32)
        d_a, d_b = d_t[:, :-1, -1, :], d_t[:, 1:, 0, :]            # (N, NR-1, W)
        i_a, i_b = i_t[:, :, :-1, -1, :], i_t[:, :, 1:, 0, :]      # (N, C, NR-1, W)
        w_seam = jnp.exp(-jnp.mean(jnp.abs(i_a - i_b), axis=1))    # (N, NR-1, W)
        total = total + jnp.sum(jnp.abs((d_a - d_b) * w_seam)) * inv_ny

    return total


def _reference(idepth, image):
    # Pure-JAX reference (mirrors the PyTorch module) for correctness check.
    gx = lambda a: a[:, :, :, :-1] - a[:, :, :, 1:]
    gy = lambda a: a[:, :, :-1, :] - a[:, :, 1:, :]
    idx, idy = gx(idepth), gy(idepth)
    imx, imy = gx(image), gy(image)
    wx = jnp.exp(-jnp.mean(jnp.abs(imx), axis=1, keepdims=True))
    wy = jnp.exp(-jnp.mean(jnp.abs(imy), axis=1, keepdims=True))
    return jnp.mean(jnp.abs(idx * wx)) + jnp.mean(jnp.abs(idy * wy))


if __name__ == "__main__":
    key = jax.random.PRNGKey(0)
    k1, k2, k3, k4 = jax.random.split(key, 4)

    # Case 1: small frame -> auto tiling; grid forced to (2, 1) for megacore.
    N, H, W = 2, 16, 16
    idepth = jax.random.uniform(k1, (N, 1, H, W), dtype=jnp.float32)
    image = jax.random.uniform(k2, (N, 3, H, W), dtype=jnp.float32)
    loss = jax.block_until_ready(inverse_depth_smoothness_loss(idepth, image))
    ref = _reference(idepth, image)
    assert jnp.allclose(loss, ref, rtol=1e-5, atol=1e-6), (loss, ref)

    # Case 2: explicit batch + row tiling -> exercises the (NB, NR) grid and
    # the row-seam glue path.
    N2, H2, W2 = 2, 32, 24
    idepth2 = jax.random.uniform(k3, (N2, 1, H2, W2), dtype=jnp.float32)
    image2 = jax.random.uniform(k4, (N2, 3, H2, W2), dtype=jnp.float32)
    loss2 = jax.block_until_ready(
        inverse_depth_smoothness_loss(idepth2, image2, batch_tile=1, row_tile=16))
    ref2 = _reference(idepth2, image2)
    assert jnp.allclose(loss2, ref2, rtol=1e-5, atol=1e-6), (loss2, ref2)

    print("KERNEL_OK")
</pallas_src>

<mosaic_0001>
module attributes {stable_mosaic.version = 11 : i64} {
  func.func @_smoothness_kernel(%arg0: i32, %arg1: i32, %arg2: memref<1x1x16x16xf32, #tpu.memory_space<vmem>>, %arg3: memref<1x3x16x16xf32, #tpu.memory_space<vmem>>, %arg4: memref<1x1x8x128xf32, #tpu.memory_space<vmem>>) attributes {dimension_semantics = [#tpu.dimension_semantics<parallel>, #tpu.dimension_semantics<parallel>], iteration_bounds = array<i64: 2, 1>, scalar_prefetch = 0 : i64, scratch_operands = 0 : i64, tpu.core_type = #tpu.core_type<tc>, window_params = [{transform_indices = @transform_0, window_bounds = array<i64: 1, 1, 16, 16>}, {transform_indices = @transform_1, window_bounds = array<i64: 1, 3, 16, 16>}, {transform_indices = @transform_2, window_bounds = array<i64: 1, 1, 8, 128>}]} {
    %c0 = arith.constant 0 : index
    %c0_0 = arith.constant 0 : index
    %c0_1 = arith.constant 0 : index
    %c0_2 = arith.constant 0 : index
    %0 = vector.load %arg2[%c0, %c0_0, %c0_1, %c0_2] : memref<1x1x16x16xf32, #tpu.memory_space<vmem>>, vector<1x1x16x16xf32>
    %1 = vector.shape_cast %0 : vector<1x1x16x16xf32> to vector<1x16x16xf32>
    %c15_i32 = arith.constant 15 : i32
    %2 = tpu.dynamic_rotate %1 by %c15_i32 dim 2 : vector<1x16x16xf32>, i32 -> vector<1x16x16xf32>
    %3 = arith.subf %1, %2 : vector<1x16x16xf32>
    %c15_i32_3 = arith.constant 15 : i32
    %4 = tpu.dynamic_rotate %1 by %c15_i32_3 dim 1 : vector<1x16x16xf32>, i32 -> vector<1x16x16xf32>
    %5 = arith.subf %1, %4 : vector<1x16x16xf32>
    %c0_4 = arith.constant 0 : index
    %c0_5 = arith.constant 0 : index
    %c0_6 = arith.constant 0 : index
    %c0_7 = arith.constant 0 : index
    %6 = vector.load %arg3[%c0_4, %c0_5, %c0_6, %c0_7] : memref<1x3x16x16xf32, #tpu.memory_space<vmem>>, vector<1x1x16x16xf32>
    %7 = vector.shape_cast %6 : vector<1x1x16x16xf32> to vector<1x16x16xf32>
    %c15_i32_8 = arith.constant 15 : i32
    %8 = tpu.dynamic_rotate %7 by %c15_i32_8 dim 2 : vector<1x16x16xf32>, i32 -> vector<1x16x16xf32>
    %9 = arith.subf %7, %8 : vector<1x16x16xf32>
    %10 = math.absf %9 : vector<1x16x16xf32>
    %c15_i32_9 = arith.constant 15 : i32
    %11 = tpu.dynamic_rotate %7 by %c15_i32_9 dim 1 : vector<1x16x16xf32>, i32 -> vector<1x16x16xf32>
    %12 = arith.subf %7, %11 : vector<1x16x16xf32>
    %13 = math.absf %12 : vector<1x16x16xf32>
    %c0_10 = arith.constant 0 : index
    %c1 = arith.constant 1 : index
    %c0_11 = arith.constant 0 : index
    %c0_12 = arith.constant 0 : index
    %14 = vector.load %arg3[%c0_10, %c1, %c0_11, %c0_12] : memref<1x3x16x16xf32, #tpu.memory_space<vmem>>, vector<1x1x16x16xf32>
    %15 = vector.shape_cast %14 : vector<1x1x16x16xf32> to vector<1x16x16xf32>
    %c15_i32_13 = arith.constant 15 : i32
    %16 = tpu.dynamic_rotate %15 by %c15_i32_13 dim 2 : vector<1x16x16xf32>, i32 -> vector<1x16x16xf32>
    %17 = arith.subf %15, %16 : vector<1x16x16xf32>
    %18 = math.absf %17 : vector<1x16x16xf32>
    %c15_i32_14 = arith.constant 15 : i32
    %19 = tpu.dynamic_rotate %15 by %c15_i32_14 dim 1 : vector<1x16x16xf32>, i32 -> vector<1x16x16xf32>
    %20 = arith.subf %15, %19 : vector<1x16x16xf32>
    %21 = math.absf %20 : vector<1x16x16xf32>
    %22 = arith.addf %10, %18 : vector<1x16x16xf32>
    %23 = arith.addf %13, %21 : vector<1x16x16xf32>
    %c0_15 = arith.constant 0 : index
    %c2 = arith.constant 2 : index
    %c0_16 = arith.constant 0 : index
    %c0_17 = arith.constant 0 : index
    %24 = vector.load %arg3[%c0_15, %c2, %c0_16, %c0_17] : memref<1x3x16x16xf32, #tpu.memory_space<vmem>>, vector<1x1x16x16xf32>
    %25 = vector.shape_cast %24 : vector<1x1x16x16xf32> to vector<1x16x16xf32>
    %c15_i32_18 = arith.constant 15 : i32
    %26 = tpu.dynamic_rotate %25 by %c15_i32_18 dim 2 : vector<1x16x16xf32>, i32 -> vector<1x16x16xf32>
    %27 = arith.subf %25, %26 : vector<1x16x16xf32>
    %28 = math.absf %27 : vector<1x16x16xf32>
    %c15_i32_19 = arith.constant 15 : i32
    %29 = tpu.dynamic_rotate %25 by %c15_i32_19 dim 1 : vector<1x16x16xf32>, i32 -> vector<1x16x16xf32>
    %30 = arith.subf %25, %29 : vector<1x16x16xf32>
    %31 = math.absf %30 : vector<1x16x16xf32>
    %32 = arith.addf %22, %28 : vector<1x16x16xf32>
    %33 = arith.addf %23, %31 : vector<1x16x16xf32>
    %cst = arith.constant 0.333333343 : f32
    %34 = vector.broadcast %cst : f32 to vector<1x16x16xf32>
    %35 = arith.mulf %32, %34 : vector<1x16x16xf32>
    %cst_20 = arith.constant 0.000000e+00 : f32
    %36 = vector.broadcast %cst_20 : f32 to vector<1x16x16xf32>
    %37 = arith.subf %36, %35 : vector<1x16x16xf32>
    %38 = math.exp %37 : vector<1x16x16xf32>
    %cst_21 = arith.constant 0.333333343 : f32
    %39 = vector.broadcast %cst_21 : f32 to vector<1x16x16xf32>
    %40 = arith.mulf %33, %39 : vector<1x16x16xf32>
    %cst_22 = arith.constant 0.000000e+00 : f32
    %41 = vector.broadcast %cst_22 : f32 to vector<1x16x16xf32>
    %42 = arith.subf %41, %40 : vector<1x16x16xf32>
    %43 = math.exp %42 : vector<1x16x16xf32>
    %44 = tpu.iota {dimensions = array<i32: 1>} : vector<16x16xi32>
    %45 = tpu.iota {dimensions = array<i32: 0>} : vector<16x16xi32>
    %c15_i32_23 = arith.constant 15 : i32
    %46 = vector.broadcast %c15_i32_23 : i32 to vector<16x16xi32>
    %47 = arith.cmpi slt, %44, %46 : vector<16x16xi32>
    %48 = math.absf %3 : vector<1x16x16xf32>
    %49 = arith.mulf %48, %38 : vector<1x16x16xf32>
    %cst_24 = arith.constant 0.000000e+00 : f32
    %50 = vector.shape_cast %47 : vector<16x16xi1> to vector<1x16x16xi1>
    %51 = vector.broadcast %cst_24 : f32 to vector<1x16x16xf32>
    %52 = arith.select %50, %49, %51 : vector<1x16x16xi1>, vector<1x16x16xf32>
    %53 = vector.shape_cast %52 : vector<1x16x16xf32> to vector<1x1x16x16xf32>
    %cst_25 = arith.constant dense<0.000000e+00> : vector<1xf32>
    %54 = vector.multi_reduction <add>, %53, %cst_25 [1, 2, 3] : vector<1x1x16x16xf32> to vector<1xf32>
    %55 = vector.shape_cast %54 : vector<1xf32> to vector<1x1x1x1xf32>
    %56 = vector.extract %55[0, 0, 0, 0] : f32 from vector<1x1x1x1xf32>
    %c15_i32_26 = arith.constant 15 : i32
    %57 = vector.broadcast %c15_i32_26 : i32 to vector<16x16xi32>
    %58 = arith.cmpi slt, %45, %57 : vector<16x16xi32>
    %59 = math.absf %5 : vector<1x16x16xf32>
    %60 = arith.mulf %59, %43 : vector<1x16x16xf32>
    %cst_27 = arith.constant 0.000000e+00 : f32
    %61 = vector.shape_cast %58 : vector<16x16xi1> to vector<1x16x16xi1>
    %62 = vector.broadcast %cst_27 : f32 to vector<1x16x16xf32>
    %63 = arith.select %61, %60, %62 : vector<1x16x16xi1>, vector<1x16x16xf32>
    %64 = vector.shape_cast %63 : vector<1x16x16xf32> to vector<1x1x16x16xf32>
    %cst_28 = arith.constant dense<0.000000e+00> : vector<1xf32>
    %65 = vector.multi_reduction <add>, %64, %cst_28 [1, 2, 3] : vector<1x1x16x16xf32> to vector<1xf32>
    %66 = vector.shape_cast %65 : vector<1xf32> to vector<1x1x1x1xf32>
    %67 = vector.extract %66[0, 0, 0, 0] : f32 from vector<1x1x1x1xf32>
    %cst_29 = arith.constant 0.00208333344 : f32
    %68 = arith.mulf %56, %cst_29 : f32
    %cst_30 = arith.constant 0.00208333344 : f32
    %69 = arith.mulf %67, %cst_30 : f32
    %70 = arith.addf %68, %69 : f32
    %71 = vector.broadcast %70 : f32 to vector<1x1x8x128xf32>
    %c0_31 = arith.constant 0 : index
    %c0_32 = arith.constant 0 : index
    %c0_33 = arith.constant 0 : index
    %c0_34 = arith.constant 0 : index
    %72 = vector.load %arg4[%c0_31, %c0_32, %c0_33, %c0_34] : memref<1x1x8x128xf32, #tpu.memory_space<vmem>>, vector<1x1x8x128xf32>
    tpu.vector_store %arg4[%c0_31, %c0_32, %c0_33, %c0_34], %71 {strides = array<i32>} : memref<1x1x8x128xf32, #tpu.memory_space<vmem>>, vector<1x1x8x128xf32>,
    return
  }
  func.func @transform_0(%arg0: i32, %arg1: i32) -> (i32, i32, i32, i32) {
    %c0_i32 = arith.constant 0 : i32
    %c0_i32_0 = arith.constant 0 : i32
    %c0_i32_1 = arith.constant 0 : i32
    return %arg0, %c0_i32, %arg1, %c0_i32_0 : i32, i32, i32, i32
  }
  func.func @transform_1(%arg0: i32, %arg1: i32) -> (i32, i32, i32, i32) {
    %c0_i32 = arith.constant 0 : i32
    %c0_i32_0 = arith.constant 0 : i32
    %c0_i32_1 = arith.constant 0 : i32
    return %arg0, %c0_i32, %arg1, %c0_i32_0 : i32, i32, i32, i32
  }
  func.func @transform_2(%arg0: i32, %arg1: i32) -> (i32, i32, i32, i32) {
    %c0_i32 = arith.constant 0 : i32
    %c0_i32_0 = arith.constant 0 : i32
    %c0_i32_1 = arith.constant 0 : i32
    return %arg0, %arg1, %c0_i32, %c0_i32_0 : i32, i32, i32, i32
  }
}

</mosaic_0001>

<bundles_post_ra>
// kernel: tpu_custom_call.1
= control target key start
LH: loop header
LB: loop body
LE: loop exit
PB: predicated region body
PF: predicated region fallthrough
CT: control target
= control target key end

     0   :  { %7 = vsyncpa [#allocation3], 0  ;;  %s1195_s0 = inlined_call_operand.hbm [shape: f32[2,1,16,16], index: 0, kind: input, shape index: {}]   ;;  %s1196_s1 = inlined_call_operand.hbm [shape: f32[2,3,16,16], index: 1, kind: input, shape index: {}]   ;;  %s1197_s2 = inlined_call_operand.hbm [shape: f32[2,1,8,128], index: 2, kind: output, shape index: {}]  }
   0x1   :  { %9 = vsyncpa [#allocation3 + $0x1], 0 }
   0x2   :  { %10 = vsyncpa [#allocation6], 0 }
   0x3   :  { %12 = vsyncpa [#allocation6 + $0x1], 0 }
   0x4   :  { %13 = vsyncpa [#allocation4], 0 }
   0x5   :  { %15 = vsyncpa [#allocation4 + $0x1], 0  ;;  %s835_s9 = smov 0   ;;  %s837_s10 = smov 0  }
   0x6   :  { %s839_s11 = smov 0   ;;  %s841_s12 = smov 0  }
   0x7   :  { %s843_s13 = smov 0   ;;  %s845_s14 = smov 0  }
   0x8 LB: > { %s559_s15 = sadd.s32 4294967295, %s811_s14   ;;  %s560_s16 = sadd.s32 4294967294, %s811_s14   ;;  %s811_s14 = sphi %s845_s14, %s21_s14   ;;  %s807_s13 = sphi %s843_s13, %s1215_s13   ;;  %s803_s12 = sphi %s841_s12, %s1214_s12   ;;  %s799_s11 = sphi %s839_s11, %s1213_s11   ;;  %s795_s10 = sphi %s837_s10, %s1212_s10   ;;  %s791_s9 = sphi %s835_s9, %s1211_s9  }
   0x9   : > { %s33_s17 = sadd.s32 1, %s807_s13  ;;  %s42_s18 = sadd.s32 1, %s799_s11 }
   0xa   : > { %p35_p0 = scmp.ge.s32.totalorder %s33_s17, 2  ;;  %p49_p1 = scmp.ne.s32.totalorder %s799_s11, %s795_s10 }
   0xb   : > { %p50_p2 = scmp.eq.s32.totalorder %s811_s14, 0  ;;  %p55_p3 = scmp.ne.s32.totalorder %s795_s10, %s791_s9 }
   0xc   : > { %s1217_s17 = smov (%p35_p0, %s33_s17), 0  ;;  %p56_p5 = scmp.eq.s32.totalorder %s559_s15, 0 }
   0xd   : > { %p876_p4 = por %p50_p2, %p49_p1  ;;  %s37_s20 = ssub.s32 %s807_s13, %s1217_s17 }
   0xe   : > { %p109_p6 = scmp.eq.s32.totalorder %s559_s15, 1  ;;  %p40_p7 = scmp.eq.s32.totalorder %s37_s20, 0 }
   0xf   : > { %p882_p8 = por %p56_p5, %p55_p3  ;;  %p115_p10 = scmp.eq.s32.totalorder %s560_s16, 1 }
  0x10   : > { %p886_p9 = por %p109_p6, %p49_p1  ;;  %p603_p13 = scmp.lt.s32.totalorder %s811_s14, 2 }
  0x11   : > { %s1201_s21 = scalar_select %p882_p8, 1, 0 }
  0x12   : > { %s1202_s22 = scalar_select %p886_p9, 1, 0 }
  0x13   : > { %s891_s23 = scalar_select %p40_p7, %s799_s11, %s42_s18  }
  0x14   : > { %p893_p11 = por %p115_p10, %p55_p3  ;;  %s900_s25 = sand.u32 1, %s799_s11  }
  0x15   : > { %s563_s26 = sshll.u32 %s900_s25, 4  ;;  %s578_s27 = sshll.u32 %s807_s13, 8 }
  0x16   : > { %s1203_s24 = scalar_select %p893_p11, 1, 0 }
  0x17   : > { %s907_s30 = scalar_lea.hbm %s1195_s0, %s578_s27  ;;  %s139_s3 = scalar_lea.vmem [#allocation2], %s563_s26 }
  0x18   : > { %s148_s4 = sshll.u32 %s139_s3, 4  ;;  %p913_p0 = pnand %p603_p13, %p876_p4  ;;  %s909_s4 = int_to_ptr.vmem [resolvable:$true] %s148_s4 }
  0x19   : > { %s136_s6 = scalar_lea.sflag [#allocation3], %s900_s25  ;;  %s665_s7 = scalar_lea.hbm %s907_s30, 256 }
  0x1a   : > { %p666_p2 = scmp.ne.s32.totalorder %s907_s30, %s665_s7  ;;  %p667_p3 = pneg %p913_p0 }
  0x1b   : > { %s670_s16 = scalar_lea.hbm %s1195_s0, 512  ;;  %p671_p4 = scmp.lt.u32.totalorder %s907_s30, %s1195_s0 }
  0x1c   : > { %p668_p5 = pnand %p667_p3, %p666_p2  ;;  %p672_p7 = scmp.lt.u32.totalorder %s670_s16, %s665_s7 }
  0x1d   : > { %p674_p13 = scmp.lt.u32.totalorder %s665_s7, %s907_s30 }
  0x1e   : > { %p669_p6 = pneg %p668_p5  ;;  %p673_p10 = por %p672_p7, %p671_p4 }
  0x20   : > { %p675_p12 = por %p674_p13, %p673_p10 }
  0x22   : > { %p676_p1 = pnand %p675_p12, %p669_p6 }
  0x24   : > { %679 = shalt.err (!%p676_p1)
}
  0x25   : > { %s680_s20 = scalar_lea.vmem %s909_s4, 256  ;;  %s813_s26 = smov [#allocation2]  }
  0x26   : > { %p681_p2 = scmp.ne.s32.totalorder %s909_s4, %s680_s20  ;;  %s685_s27 = sshll.u32 %s813_s26, 4  ;;  %s686_s27 = int_to_ptr.vmem [resolvable:$false] %s685_s27 }
  0x27   : > { %s687_s28 = scalar_lea.vmem %s686_s27, 512  ;;  %p688_p9 = scmp.lt.s32.totalorder %s909_s4, %s686_s27 }
  0x28   : > { %p683_p5 = pnand %p681_p2, %p667_p3  ;;  %p689_p4 = scmp.lt.s32.totalorder %s687_s28, %s680_s20 }
  0x2a   : > { %p684_p11 = pneg %p683_p5  ;;  %p690_p7 = por %p689_p4, %p688_p9 }
  0x2c   : > { %p691_p10 = pnand %p690_p7, %p684_p11 }
  0x2e   : > { %694 = shalt.err (!%p691_p10)
}
  0x2f   : > { %s814_s29 = smov 128   ;;  %s815_s3 = smov 8  }
  0x30   : > { %595 = dma.hbm_to_vmem [thread:$0]  (!%p913_p0), %s907_s30, 256, %s909_s4, %s136_s6, %s814_s29, %s814_s29, %s815_s3  }
  0x31   : > { %p179_p9 = scmp.lt.s32.totalorder %s811_s14, 3  ;;  %s579_s7 = smul.u32 48, %s900_s25 }
  0x32   : > { %p1205_p11 = scmp.ge.s32.totalorder %s811_s14, 1  ;;  %s580_s15 = smul.u32 768, %s807_s13 }
  0x33   : > { %s162_s20 = scalar_lea.vmem [#allocation5], %s579_s7  ;;  %s159_s30 = scalar_lea.sflag [#allocation6], %s900_s25 }
  0x34   : > { %p953_p12 = pnand %p1205_p11, %p179_p9  ;;  %s961_s19 = scalar_lea.hbm %s1196_s1, %s580_s15 }
  0x35   : > { %s171_s26 = sshll.u32 %s162_s20, 4  ;;  %s695_s4 = scalar_lea.hbm %s961_s19, 768  ;;  %s963_s26 = int_to_ptr.vmem [resolvable:$true] %s171_s26 }
  0x36   : > { %p696_p1 = scmp.ne.s32.totalorder %s961_s19, %s695_s4  ;;  %s700_s28 = scalar_lea.hbm %s1196_s1, 1536 }
  0x37   : > { %p701_p2 = scmp.lt.u32.totalorder %s961_s19, %s1196_s1  ;;  %p702_p5 = scmp.lt.u32.totalorder %s700_s28, %s695_s4 }
  0x38   : > { %p698_p6 = pnand %p696_p1, %p667_p3  ;;  %p704_p7 = scmp.lt.u32.totalorder %s695_s4, %s961_s19 }
  0x39   : > { %p703_p4 = por %p702_p5, %p701_p2 }
  0x3a   : > { %p699_p13 = pneg %p698_p6 }
  0x3b   : > { %p705_p10 = por %p704_p7, %p703_p4 }
  0x3d   : > { %p706_p9 = pnand %p705_p10, %p699_p13 }
  0x3f   : > { %709 = shalt.err (!%p706_p9)
}
  0x40   : > { %s710_s7 = scalar_lea.vmem %s963_s26, 768  ;;  %s816_s18 = smov [#allocation5]  }
  0x41   : > { %p711_p11 = scmp.ne.s32.totalorder %s963_s26, %s710_s7  ;;  %s715_s20 = sshll.u32 %s816_s18, 4  ;;  %s716_s20 = int_to_ptr.vmem [resolvable:$false] %s715_s20 }
  0x42   : > { %s717_s6 = scalar_lea.vmem %s716_s20, 1536  ;;  %p718_p8 = scmp.lt.s32.totalorder %s963_s26, %s716_s20 }
  0x43   : > { %p713_p1 = pnand %p711_p11, %p667_p3  ;;  %p719_p2 = scmp.lt.s32.totalorder %s717_s6, %s710_s7 }
  0x45   : > { %p714_p6 = pneg %p713_p1  ;;  %p720_p5 = por %p719_p2, %p718_p8 }
  0x47   : > { %p721_p4 = pnand %p720_p5, %p714_p6 }
  0x49   : > { %724 = shalt.err (!%p721_p4)
}
  0x4a   : > { %598 = dma.hbm_to_vmem [thread:$0]  (!%p913_p0), %s961_s19, 768, %s963_s26, %s159_s30, %s814_s29, %s814_s29, %s815_s3  }
  0x4b   : > { %183 = sbr.rel (%p953_p12) target bundleno = 700 (0x2bc), region = 28  ;;  %s997_s4 = sand.u32 (!%p953_p12), 1, %s795_s10  }
  0x4c   : > { %s568_s27 = sshll.u32 (!%p953_p12), %s997_s4, 4  ;;  %s186_s28 = scalar_lea.sflag (!%p953_p12), [#allocation3], %s997_s4 }
  0x4d   : > { %s189_s5 = scalar_lea.vmem (!%p953_p12), [#allocation2], %s568_s27  ;;  %p1207_p8 = scmp.ne.s32.totalorder (!%p953_p12), %s1201_s21, 0 }
  0x52   : > { %778 = dma.done.wait (%p1207_p8), %s186_s28, 256  }
  0x53   : > { %780 = vsyncadd (%p1207_p8), %s186_s28, 4294967040  ;;  %s581_s25 = smul.u32 48, %s997_s4  ;;  %s195_s29 = scalar_lea.sflag [#allocation6], %s997_s4 }
  0x55   : > { %s198_s3 = scalar_lea.vmem [#allocation5], %s581_s25 }
  0x56   : > { %782 = dma.done.wait (%p1207_p8), %s195_s29, 768  }
  0x57   : > { %784 = vsyncadd (%p1207_p8), %s195_s29, 4294966528  ;;  %v1011_v0 = vld [vmem:[%s198_s3] sm:$0xff]  ;;  %v1013_v1 = vld [vmem:[%s198_s3 + $0x10] sm:$0xff]  ;;  %s817_s8 = smov 16   ;;  %vm228_vm0 = vcmask 1047680   ;;  %v253_v24 = vlaneseq  ;;  %s818_s21 = smov 127  }
  0x58   : > { %262 = vrot.lane.b32.xlu0 %v1011_v0, %s817_s8  ;;  %297 = vrot.lane.b32.xlu1 %v1013_v1, %s817_s8  ;;  %v1019_v2 = vld [vmem:[%s198_s3 + $0x8] sm:$0xff]  ;;  %v1021_v3 = vld [vmem:[%s198_s3 + $0x18] sm:$0xff]  ;;  %v286_v26 = vrot.slane %v1011_v0, 1  ;;  %v321_v27 = vrot.slane %v1013_v1, 1  ;;  %vm398_vm3 = vcmask 130048   ;;  %s569_s19 = sshll.u32 %s997_s4, 3 }
  0x59   : > { %v1027_v4 = vld [vmem:[%s198_s3 + $0x20] sm:$0xff]  ;;  %v1029_v5 = vld [vmem:[%s198_s3 + $0x28] sm:$0xff]  ;;  %v1068_v25 = vshrl.u32 %v253_v24, 7  ;;  %v287_v28 = vrot.slane %v1019_v2, 1  ;;  %v322_v29 = vrot.slane %v1021_v3, 1  ;;  %s575_s30 = sshll.u32 %s803_s12, 7 }
  0x5a   : > { %v1035_v6 = vld [vmem:[%s189_s5] sm:$0xff]  ;;  %v1037_v7 = vld [vmem:[%s189_s5 + $0x8] sm:$0xff]  ;;  %v360_v30 = vrot.slane %v1027_v4, 1  ;;  %v361_v31 = vrot.slane %v1029_v5, 1  ;;  %s223_s18 = scalar_lea.vmem [#allocation7], %s569_s19  ;;  %s1146_s5 = scalar_lea.hbm %s1197_s2, %s575_s30 }
  0x5b   : > { %vm255_vm1 = vcmp.lt.s32.totalorder %v1068_v25, 7  ;;  %s451_s20 = sshll.u32 %s223_s18, 4  ;;  %s437_s25 = scalar_lea.sflag [#allocation4], %s997_s4  ;;  %s1148_s20 = int_to_ptr.vmem [resolvable:$true] %s451_s20 }
  0x5c   : > { %265 = vrot.lane.b32.xlu0 %v1019_v2, %s817_s8  ;;  %300 = vrot.lane.b32.xlu1 %v1021_v3, %s817_s8  ;;  %v289_v32 = vsel %vm255_vm1, %v287_v28, %v286_v26  ;;  %v324_v33 = vsel %vm255_vm1, %v322_v29, %v321_v27  ;;  %v288_v34 = vsel %vm255_vm1, %v286_v26, %v287_v28  ;;  %s725_s12 = scalar_lea.vmem %s1148_s20, 128  ;;  %p1208_p3 = scmp.ne.s32.totalorder %s1202_s22, 0 }
  0x5d   : > { %v291_v35 = vsub.f32 %v1019_v2, %v289_v32  ;;  %v323_v36 = vsel %vm255_vm1, %v321_v27, %v322_v29  ;;  %v326_v37 = vsub.f32 %v1021_v3, %v324_v33  ;;  %v363_v39 = vsel %vm255_vm1, %v361_v31, %v360_v30  ;;  %p726_p0 = scmp.ne.s32.totalorder %s1148_s20, %s725_s12  ;;  %s819_s29 = smov [#allocation7]  }
  0x5e   : > { %v290_v41 = vsub.f32 %v1011_v0, %v288_v34  ;;  %v325_v42 = vsub.f32 %v1013_v1, %v323_v36  ;;  %v362_v45 = vsel %vm255_vm1, %v360_v30, %v361_v31  ;;  %v365_v46 = vsub.f32 %v1029_v5, %v363_v39  ;;  %s729_s3 = sshll.u32 %s819_s29, 4  ;;  %s730_s3 = int_to_ptr.vmem [resolvable:$false] %s729_s3 }
  0x5f   : > { %v293_v43 = vand.u32 2147483647, %v291_v35  ;;  %v328_v44 = vand.u32 2147483647, %v326_v37  ;;  %v364_v53 = vsub.f32 %v1027_v4, %v362_v45  ;;  %v390_v30 = vadd.s32 8, %v1068_v25  ;;  %p727_p12 = pnand %p726_p0, %p1208_p3  ;;  %p732_p7 = scmp.lt.s32.totalorder %s1148_s20, %s730_s3 }
  0x60   : > { %336 = vrot.lane.b32.xlu0 %v1027_v4, %s817_s8  ;;  %339 = vrot.lane.b32.xlu1 %v1029_v5, %s817_s8  ;;  %v292_v51 = vand.u32 2147483647, %v290_v41  ;;  %v327_v52 = vand.u32 2147483647, %v325_v42  ;;  %v367_v55 = vand.u32 2147483647, %v365_v46 }
  0x61   : > { %v332_v54 = vadd.f32 %v328_v44, %v293_v43  ;;  %v366_v61 = vand.u32 2147483647, %v364_v53  ;;  %vm412_vm2 = vcmp.lt.s32.totalorder %v390_v30, 15  ;;  %p728_p13 = pneg %p727_p12 }
  0x62   : > { %v331_v60 = vadd.f32 %v327_v52, %v292_v51 }
  0x63   : > { %v371_v62 = vadd.f32 %v367_v55, %v332_v54 }
  0x64   : > { %229 = vrot.lane.b32.xlu0 %v1035_v6, %s817_s8  ;;  %232 = vrot.lane.b32.xlu1 %v1037_v7, %s817_s8 }
  0xca   : > { %v263_v8 = vpop.permute.xlu0 %262  ;;  %v298_v9 = vpop.permute.xlu1 %297 }
  0xcb   : > { %v264_v10 = vsel %vm228_vm0, %v263_v8, %v1011_v0  ;;  %v299_v11 = vsel %vm228_vm0, %v298_v9, %v1013_v1 }
  0xcc   : > { %268 = vrot.lane.b32.xlu0 %v264_v10, %s817_s8 }
  0xce   : > { %v266_v12 = vpop.permute.xlu0 %265  ;;  %v301_v13 = vpop.permute.xlu1 %300 }
  0xcf   : > { %v267_v14 = vsel %vm228_vm0, %v266_v12, %v1019_v2  ;;  %v302_v15 = vsel %vm228_vm0, %v301_v13, %v1021_v3  ;;  %v381_v12 = vmul.f32 0.33333334, %v371_v62 }
  0xd0   : > { %270 = vrot.lane.b32.xlu1 %v267_v14, %s817_s8  ;;  %303 = vrot.lane.b32.xlu0 %v299_v11, %s817_s8  ;;  %v370_v11 = vadd.f32 %v366_v61, %v331_v60 }
  0xd2   : > { %v337_v16 = vpop.permute.xlu0 %336  ;;  %v340_v17 = vpop.permute.xlu1 %339 }
  0xd3   : > { %v338_v18 = vsel %vm228_vm0, %v337_v16, %v1027_v4  ;;  %v341_v19 = vsel %vm228_vm0, %v340_v17, %v1029_v5  ;;  %v383_v16 = vsub.f32 0.0, %v381_v12 }
  0xd4   : > { %305 = vrot.lane.b32.xlu1 %v302_v15, %s817_s8  ;;  %342 = vrot.lane.b32.xlu0 %v338_v18, %s817_s8  ;;  %v380_v15 = vmul.f32 0.33333334, %v370_v11 }
  0xd5   : > { %v386_v18 = vmul.f32 1.442695, %v383_v16 }
  0xd6   : > { %v230_v20 = vpop.permute.xlu0 %229  ;;  %v233_v21 = vpop.permute.xlu1 %232  ;;  %v382_v17 = vsub.f32 0.0, %v380_v15 }
  0xd7   : > { %v231_v22 = vsel %vm228_vm0, %v230_v20, %v1035_v6  ;;  %v234_v23 = vsel %vm228_vm0, %v233_v21, %v1037_v7  ;;  %v252_v20 = vrot.slane %v1037_v7, 1  ;;  %657 = vpow2.f32 %v386_v18 }
  0xd8   : > { %344 = vrot.lane.b32.xlu1 %v341_v19, %s817_s8  ;;  %235 = vrot.lane.b32.xlu0 %v231_v22, %s817_s8  ;;  %v251_v19 = vrot.slane %v1035_v6, 1  ;;  %v384_v21 = vmul.f32 1.442695, %v382_v17 }
  0xda   : > { %v257_v22 = vsel %vm255_vm1, %v252_v20, %v251_v19  ;;  %659 = vpow2.f32 %v384_v21 }
  0xdb   : > { %v259_v26 = vsub.f32 %v1037_v7, %v257_v22 }
  0xdc   : > { %237 = vrot.lane.b32.xlu1 %v234_v23, %s817_s8  ;;  %v256_v23 = vsel %vm255_vm1, %v251_v19, %v252_v20  ;;  %s731_s8 = scalar_lea.vmem %s730_s3, 256 }
  0xdd   : > { %v258_v27 = vsub.f32 %v1035_v6, %v256_v23  ;;  %v414_v28 = vand.u32 2147483647, %v259_v26  ;;  %p733_p10 = scmp.lt.s32.totalorder %s731_s8, %s725_s12 }
  0xdf   : > { %v413_v31 = vand.u32 2147483647, %v258_v27  ;;  %p734_p9 = por %p733_p10, %p732_p7 }
  0xe1   : > { %v658_v29 = vpop.eup %657  ;;  %p735_p11 = pnand %p734_p9, %p728_p13 }
  0xe2   : > { %v416_v33 = vmul.f32 %v658_v29, %v414_v28 }
  0xe4   : > { %v660_v32 = vpop.eup %659  ;;  %v418_v35 = vsel %vm412_vm2, %v416_v33, 0.0 }
  0xe5   : > { %v415_v34 = vmul.f32 %v660_v32, %v413_v31  ;;  %v420_v37 = vsel %vm398_vm3, %v418_v35, 0.0 }
  0xe7   : > { %v419_v36 = vsel %vm398_vm3, %v415_v34, 0.0 }
 0x13e   : > { %v269_v38 = vpop.permute.xlu0 %268 }
 0x13f   : > { %v272_v40 = vsel %vm228_vm0, %v269_v38, %v1011_v0  ;;  %v421_v38 = vadd.f32 %v420_v37, %v419_v36 }
 0x140   : > { %276 = vrot.lane.b32.xlu0 %v272_v40, %s818_s21 }
 0x142   : > { %v271_v47 = vpop.permute.xlu1 %270  ;;  %v304_v48 = vpop.permute.xlu0 %303 }
 0x143   : > { %v273_v49 = vsel %vm228_vm0, %v271_v47, %v1019_v2  ;;  %v307_v50 = vsel %vm228_vm0, %v304_v48, %v1013_v1 }
 0x144   : > { %278 = vrot.lane.b32.xlu1 %v273_v49, %s818_s21  ;;  %311 = vrot.lane.b32.xlu0 %v307_v50, %s818_s21 }
 0x146   : > { %v306_v56 = vpop.permute.xlu1 %305  ;;  %v343_v57 = vpop.permute.xlu0 %342 }
 0x147   : > { %v308_v58 = vsel %vm228_vm0, %v306_v56, %v1021_v3  ;;  %v346_v59 = vsel %vm228_vm0, %v343_v57, %v1027_v4 }
 0x148   : > { %313 = vrot.lane.b32.xlu1 %v308_v58, %s818_s21  ;;  %350 = vrot.lane.b32.xlu0 %v346_v59, %s818_s21 }
 0x14a   : > { %v345_v63 = vpop.permute.xlu1 %344  ;;  %v236_v8 = vpop.permute.xlu0 %235 }
 0x14b   : > { %v347_v9 = vsel %vm228_vm0, %v345_v63, %v1029_v5  ;;  %v239_v10 = vsel %vm228_vm0, %v236_v8, %v1035_v6 }
 0x14c   : > { %352 = vrot.lane.b32.xlu1 %v347_v9, %s818_s21  ;;  %243 = vrot.lane.b32.xlu0 %v239_v10, %s818_s21 }
 0x14e   : > { %v238_v13 = vpop.permute.xlu1 %237 }
 0x14f   : > { %v240_v14 = vsel %vm228_vm0, %v238_v13, %v1037_v7 }
 0x150   : > { %245 = vrot.lane.b32.xlu1 %v240_v14, %s818_s21 }
 0x174   : > { %422 = vadd.xlane.f32.xlu1 %v421_v38 }
 0x1b2   : > { %v277_v39 = vpop.permute.xlu0 %276 }
 0x1b3   : > { %v282_v42 = vsub.f32 %v1011_v0, %v277_v39 }
 0x1b5   : > { %v284_v46 = vand.u32 2147483647, %v282_v42 }
 0x1b6   : > { %v279_v40 = vpop.permute.xlu1 %278  ;;  %v312_v41 = vpop.permute.xlu0 %311 }
 0x1b7   : > { %v317_v25 = vsub.f32 %v1013_v1, %v312_v41  ;;  %v283_v47 = vsub.f32 %v1019_v2, %v279_v40 }
 0x1b9   : > { %v319_v43 = vand.u32 2147483647, %v317_v25  ;;  %v285_v54 = vand.u32 2147483647, %v283_v47 }
 0x1ba   : > { %v314_v44 = vpop.permute.xlu1 %313  ;;  %v351_v45 = vpop.permute.xlu0 %350 }
 0x1bb   : > { %v318_v48 = vsub.f32 %v1021_v3, %v314_v44  ;;  %v356_v49 = vsub.f32 %v1027_v4, %v351_v45  ;;  %v329_v50 = vadd.f32 %v319_v43, %v284_v46 }
 0x1bd   : > { %v320_v51 = vand.u32 2147483647, %v318_v48  ;;  %v358_v52 = vand.u32 2147483647, %v356_v49 }
 0x1be   : > { %v353_v53 = vpop.permute.xlu1 %352  ;;  %v244_v3 = vpop.permute.xlu0 %243 }
 0x1bf   : > { %v368_v55 = vadd.f32 %v358_v52, %v329_v50  ;;  %v357_v0 = vsub.f32 %v1029_v5, %v353_v53  ;;  %v330_v56 = vadd.f32 %v320_v51, %v285_v54  ;;  %v249_v4 = vsub.f32 %v1035_v6, %v244_v3 }
 0x1c0   : > { %v389_v5 = vand.u32 127, %v253_v24 }
 0x1c1   : > { %v372_v1 = vmul.f32 0.33333334, %v368_v55  ;;  %v359_v57 = vand.u32 2147483647, %v357_v0  ;;  %v392_v8 = vand.u32 2147483647, %v249_v4 }
 0x1c2   : > { %v246_v63 = vpop.permute.xlu1 %245  ;;  %vm391_vm4 = vcmp.lt.s32.totalorder %v389_v5, 15 }
 0x1c3   : > { %v374_v58 = vsub.f32 0.0, %v372_v1  ;;  %v369_v59 = vadd.f32 %v359_v57, %v330_v56  ;;  %v250_v9 = vsub.f32 %v1037_v7, %v246_v63 }
 0x1c5   : > { %v376_v60 = vmul.f32 1.442695, %v374_v58  ;;  %v373_v61 = vmul.f32 0.33333334, %v369_v59  ;;  %v393_v12 = vand.u32 2147483647, %v250_v9 }
 0x1c7   : > { %661 = vpow2.f32 %v376_v60  ;;  %v375_v2 = vsub.f32 0.0, %v373_v61 }
 0x1c9   : > { %v378_v62 = vmul.f32 1.442695, %v375_v2 }
 0x1cb   : > { %663 = vpow2.f32 %v378_v62 }
 0x1d1   : > { %v662_v10 = vpop.eup %661 }
 0x1d2   : > { %v394_v11 = vmul.f32 %v662_v10, %v392_v8 }
 0x1d4   : > { %v396_v15 = vsel %vm391_vm4, %v394_v11, 0.0 }
 0x1d5   : > { %v664_v13 = vpop.eup %663  ;;  %v399_v17 = vsel %vm398_vm3, %v396_v15, 0.0 }
 0x1d6   : > { %v395_v14 = vmul.f32 %v664_v13, %v393_v12 }
 0x1d8   : > { %v397_v16 = vsel %vm391_vm4, %v395_v14, 0.0 }
 0x1d9   : > { %v400_v18 = vsel %vm398_vm3, %v397_v16, 0.0 }
 0x1da   : > { %v401_v6 = vadd.f32 %v400_v18, %v399_v17 }
 0x1dc   : > { %402 = vadd.xlane.f32.xlu0 %v401_v6 }
 0x201   : > { %v423_v19 = vpop.xlane.xlu1 %422 }
 0x202   : > { %v424_v20 = vrot.slane %v423_v19, 4 }
 0x204   : > { %v425_v7 = vadd.f32 %v424_v20, %v423_v19 }
 0x206   : > { %v426_v24 = vrot.slane %v425_v7, 2 }
 0x208   : > { %v427_v26 = vadd.f32 %v426_v24, %v425_v7 }
 0x20a   : > { %v428_v29 = vrot.slane %v427_v26, 1 }
 0x20c   : > { %v429_v32 = vadd.f32 %v428_v29, %v427_v26 }
 0x269   : > { %v403_v21 = vpop.xlane.xlu0 %402 }
 0x26a   : > { %v404_v22 = vrot.slane %v403_v21, 4 }
 0x26c   : > { %v405_v23 = vadd.f32 %v404_v22, %v403_v21 }
 0x26e   : > { %v406_v27 = vrot.slane %v405_v23, 2 }
 0x270   : > { %v407_v28 = vadd.f32 %v406_v27, %v405_v23 }
 0x272   : > { %v408_v30 = vrot.slane %v407_v28, 1 }
 0x274   : > { %v409_v31 = vadd.f32 %v408_v30, %v407_v28 }
 0x276   : > { %582 = vpush %v409_v31 }
 0x277   : > { %584 = vpush %v429_v32 }
 0x2a7   : > { %s583_s26 = spop %582 }
 0x2a8   : > { %s431_s15 = smul.f32 0.0020833334, %s583_s26  ;;  %s585_s16 = spop %584 }
 0x2a9   : > { %s432_s7 = smul.f32 0.0020833334, %s585_s16 }
 0x2ab   : > { %s433_s6 = sadd.f32 %s432_s7, %s431_s15 }
 0x2ad   : > { %v434_v33 = vstv %s433_s6 }
 0x2ae   : > { %435 = vst [vmem:[%s223_s18] sm:$0xff] %v434_v33 }
 0x2af   : > { %738 = shalt.err (!%p735_p11)
}
 0x2b0   : > { %s739_s4 = scalar_lea.hbm %s1146_s5, 128  ;;  %s743_s26 = scalar_lea.hbm %s1197_s2, 256 }
 0x2b1   : > { %p740_p1 = scmp.ne.s32.totalorder %s1146_s5, %s739_s4  ;;  %p744_p5 = scmp.lt.u32.totalorder %s1146_s5, %s1197_s2 }
 0x2b2   : > { %p745_p4 = scmp.lt.u32.totalorder %s743_s26, %s739_s4  ;;  %p747_p0 = scmp.lt.u32.totalorder %s739_s4, %s1146_s5 }
 0x2b3   : > { %p741_p6 = pnand %p740_p1, %p1208_p3 }
 0x2b4   : > { %p746_p8 = por %p745_p4, %p744_p5 }
 0x2b5   : > { %p742_p2 = pneg %p741_p6 }
 0x2b6   : > { %p748_p12 = por %p747_p0, %p746_p8 }
 0x2b8   : > { %p749_p13 = pnand %p748_p12, %p742_p2 }
 0x2ba   : > { %752 = shalt.err (!%p749_p13)
}
 0x2bb   : > { %590 = dma.vmem_to_hbm [thread:$0]  (%p1208_p3), %s1148_s20, 128, %s1146_s5, %s437_s25  }
 0x2bc PF: > { %s463_s16 = sand.u32 1, %s791_s9   ;;  %p1209_p7 = scmp.ne.s32.totalorder %s1203_s24, 0 }
 0x2bd   : > { %p1210_p10 = scmp.ge.s32.totalorder %s811_s14, 2  ;;  %s464_s7 = scalar_lea.sflag [#allocation4], %s463_s16 }
 0x2bf   : > { %p600_p9 = pnand %p1210_p10, %p1209_p7 }
 0x2c1   : > { %786 = dma.done.wait (!%p600_p9), %s464_s7, 128  }
 0x2c2   : > { %788 = vsyncadd (!%p600_p9), %s464_s7, 4294967168  ;;  %s21_s14 = sadd.s32 1, %s811_s14   ;;  %s1211_s9 = smov %s795_s10 }
 0x2c3   : > { %p18_p11 = scmp.ge.s32.totalorder %s21_s14, 4   ;;  %s1212_s10 = smov %s799_s11 }
 0x2c4   : > { %s1213_s11 = smov %s891_s23  ;;  %s1214_s12 = smov %s807_s13 }
 0x2c5   : > { %s1215_s13 = smov %s1217_s17  ;;  %20 = sbr.rel (!%p18_p11) target bundleno = 8 (0x8), region = 88 }
 0x2cc   :  { %469 = vsyncpa [#allocation3], 1 }
 0x2cd   :  { %471 = vsyncpa [#allocation3 + $0x1], 1 }
 0x2ce   :  { %472 = vsyncpa [#allocation6], 1 }
 0x2cf   :  { %474 = vsyncpa [#allocation6 + $0x1], 1 }
 0x2d0   :  { %475 = vsyncpa [#allocation4], 1 }
 0x2d1   :  { %477 = vsyncpa [#allocation4 + $0x1], 1 }

</bundles_post_ra>
